<compile_context>
chip_gen: v5e
topology: v5e:2x2
jax: 0.10.0
libtpu: 0.0.40
codegen_flags: <defaults>
</compile_context>

<pallas_src>
import functools

import jax
import jax.numpy as jnp
from jax.experimental import pallas as pl
from jax.experimental.pallas import tpu as pltpu


def _padded_width(n):
    """Round a lane-piece width up to a 128 multiple when inflation is modest,
    so the in-kernel lane-concat of the K row-shifted pieces stays vreg-aligned."""
    p = ((n + 127) // 128) * 128
    return p if p <= 2 * n else n


def _make_banded_weights(w_oihw, W, P):
    """OIHW conv weights -> (K, W*Cin, W*Cout) block-Toeplitz matrices.

    band[dy, w'*Cin + c, w*Cout + o] = w[o, c, dy, w'-w+P]  if 0 <= w'-w+P < K
                                     = 0                    otherwise
    so  out[h, w*Cout + o] = sum_dy ( x_flat[h + dy - P] @ band[dy] )
    is a same-padded KxK conv with the width zero-padding folded into the band.
    """
    Cout, Cin, K, _ = w_oihw.shape
    w_t = jnp.transpose(w_oihw, (2, 3, 1, 0))             # (dy, dx, Cin, Cout)
    wprime = jnp.arange(W)[:, None]                       # (W, 1) = w' (input col)
    wcol = jnp.arange(W)[None, :]                         # (1, W) = w  (output col)
    dx = wprime - wcol + P                                 # (W, W)
    valid = (dx >= 0) & (dx < K)
    dx_c = jnp.clip(dx, 0, K - 1)
    g = w_t[:, dx_c, :, :]                                 # (K, W, W, Cin, Cout)
    g = jnp.where(valid[None, :, :, None, None], g, 0.0)
    band = jnp.transpose(g, (0, 1, 3, 2, 4))               # (dy, w', Cin, w, Cout)
    return band.reshape(K, W * Cin, W * Cout)


def prepare_weights(w1, b1, w2, b2, *, W):
    """Precompute bf16 fused bands + lane-tiled biases ONCE at weight-load time."""
    Cmid, Cin, K, _ = w1.shape
    Cout = w2.shape[0]
    P = K // 2
    WCin, WCin_p = W * Cin, _padded_width(W * Cin)
    WCmid, WCout = W * Cmid, W * Cout

    band1 = _make_banded_weights(w1, W, P)                           # (K, WCin, WCmid)
    band1 = jnp.pad(band1, ((0, 0), (0, WCin_p - WCin), (0, 0)))     # lane-align pieces
    band1 = band1.reshape(K * WCin_p, WCmid).astype(jnp.bfloat16)

    band2 = _make_banded_weights(w2, W, P)                           # (K, WCmid, WCout)
    band2 = band2.reshape(K * WCmid, WCout).astype(jnp.bfloat16)
    # TODO(synk): if W*Cmid is not 128-aligned, lane-pad it like WCin so conv2's
    # in-kernel concat pieces are vreg-aligned too.

    b1r = jnp.tile(b1, W).reshape(1, WCmid).astype(jnp.float32)
    b2r = jnp.tile(b2, W).reshape(1, WCout).astype(jnp.float32)
    return band1, b1r, band2, b2r


def _resblock_kernel(x_ref, band1_ref, b1_ref, band2_ref, b2_ref, o_ref, *, H, K):
    """One batch block: R = images_per_block * H lane-dense rows.

    x_ref    : (R, WCin_p)        bf16 flattened NHWC rows (lane-padded)
    band1_ref: (K*WCin_p, WCmid)  bf16 fused block-Toeplitz conv1 weights
    b1_ref   : (1, WCmid)         f32 conv1 bias tiled over W
    band2_ref: (K*WCmid, WCout)   bf16 fused conv2 weights
    b2_ref   : (1, WCout)         f32 conv2 bias tiled over W
    o_ref    : (R, WCout)         lane-dense output
    """
    R = x_ref.shape[0]
    P = K // 2
    row = jax.lax.broadcasted_iota(jnp.int32, (R, 1), 0) % H   # row within image

    def shifted_cat(v):
        # Lane-concat the K row-shifted views [v[r + dy - P]]_dy, zeroed across
        # image boundaries. Sublane rolls are XLU work (co-issue next to MXU/VPU);
        # rolls/masks are done in f32 (native sublane rotate), operands are cast
        # to bf16 only at the MXU boundary.
        parts = []
        for dy in range(K):
            s = dy - P                                   # source row offset
            if s == 0:
                parts.append(v)
                continue
            shifted = pltpu.roll(v, shift=(-s) % R, axis=0)
            oob = (row < -s) if s < 0 else (row >= H - s)
            parts.append(jnp.where(oob, jnp.zeros_like(v), shifted))
        return jnp.concatenate(parts, axis=-1)

    # conv1 + bias + ReLU: a single MXU matmul, contraction depth K*WCin_p.
    x_cat = shifted_cat(x_ref[...].astype(jnp.float32)).astype(band1_ref.dtype)
    h1 = jnp.dot(x_cat, band1_ref[...], preferred_element_type=jnp.float32)
    h1 = jnp.maximum(h1 + b1_ref[...], 0.0)

    # conv2 + bias: the intermediate stays in vregs (no VMEM scratch round trip).
    m_cat = shifted_cat(h1).astype(band2_ref.dtype)
    h2 = jnp.dot(m_cat, band2_ref[...], preferred_element_type=jnp.float32)
    o_ref[...] = (h2 + b2_ref[...]).astype(o_ref.dtype)


def _pick_batch_block(N):
    """Images per grid step.

    v7x has 2 TensorCores/chip: keep >= 2 grid steps so
    dimension_semantics=("parallel",) can shard the batch across them.
    Single-TC v5e/v6e: collapse the whole batch into one step (kills ~0.35us/step
    grid overhead and enlarges the matmul M dimension).
    """
    kind = ""
    try:
        kind = jax.devices()[0].device_kind.lower()
    except Exception:
        pass
    if "7" in kind and N >= 2 and N % 2 == 0:
        return N // 2
    return N


@functools.partial(jax.jit, static_argnames=("batch_block",))
def _forward(x_nchw, band1, b1r, band2, b2r, *, batch_block):
    N, Cin, H, W = x_nchw.shape
    WCin, WCin_p = W * Cin, _padded_width(W * Cin)
    WCmid, WCout = b1r.shape[-1], b2r.shape[-1]
    K = band1.shape[0] // WCin_p
    Cout = WCout // W

    NB = batch_block
    n_blocks = N // NB
    R = NB * H

    # TODO(synk): the NCHW <-> lane-dense relayouts are extra HBM round trips of
    # the activations; keep activations in NHWC / (rows, W*C) upstream to drop them.
    x = jnp.transpose(x_nchw, (0, 2, 3, 1)).reshape(N, H, WCin)
    if WCin_p != WCin:
        x = jnp.pad(x, ((0, 0), (0, 0), (0, WCin_p - WCin)))
    x = x.reshape(n_blocks, R, WCin_p).astype(jnp.bfloat16)

    kernel = functools.partial(_resblock_kernel, H=H, K=K)

    # TODO(synk): at large W/C the bands scale as W^2*C^2 — mark their in_specs
    # pipeline_mode=pl.Buffered(1) (block index never changes), raise
    # vmem_limit_bytes, and strip-tile H with a K-1 halo (v7x's 64 MiB VMEM first).
    out_flat = pl.pallas_call(
        kernel,
        out_shape=jax.ShapeDtypeStruct((n_blocks, R, WCout), x_nchw.dtype),
        grid=(n_blocks,),
        in_specs=[
            pl.BlockSpec((pl.Squeezed(), R, WCin_p), lambda n: (n, 0, 0)),
            pl.BlockSpec((K * WCin_p, WCmid), lambda n: (0, 0)),
            pl.BlockSpec((1, WCmid), lambda n: (0, 0)),
            pl.BlockSpec((K * WCmid, WCout), lambda n: (0, 0)),
            pl.BlockSpec((1, WCout), lambda n: (0, 0)),
        ],
        out_specs=pl.BlockSpec((pl.Squeezed(), R, WCout), lambda n: (n, 0, 0)),
        compiler_params=pltpu.CompilerParams(dimension_semantics=("parallel",)),
    )(x, band1, b1r, band2, b2r)

    out_nhwc = out_flat.reshape(N, H, W, Cout)
    return jnp.transpose(out_nhwc, (0, 3, 1, 2))          # back to NCHW


def residual_block(x_nchw, params, batch_block=None):
    """Forward of Residual_Block: conv1 -> ReLU -> conv2 (same padding, no skip-add)."""
    N = x_nchw.shape[0]
    if batch_block is None:
        batch_block = _pick_batch_block(N)
    if N % batch_block != 0:
        batch_block = N
    band1, b1r, band2, b2r = params
    return _forward(x_nchw, band1, b1r, band2, b2r, batch_block=batch_block)


def _reference(x_nchw, w1, b1, w2, b2):
    """Pure-JAX reference mirroring the PyTorch module (for validation)."""
    K = w1.shape[2]
    P = K // 2

    def conv(x, w, b):
        y = jax.lax.conv_general_dilated(
            x, w, window_strides=(1, 1), padding=[(P, P), (P, P)],
            dimension_numbers=("NCHW", "OIHW", "NCHW"))
        return y + b[None, :, None, None]

    h = jnp.maximum(conv(x_nchw, w1, b1), 0.0)
    return conv(h, w2, b2)


if __name__ == "__main__":
    # Small shapes consistent with the module: N=2, Cin=4, Cmid=Cout=8, 16x16, k=3.
    N, Cin, Cmid, Cout, H, W, K = 2, 4, 8, 8, 16, 16, 3

    key = jax.random.PRNGKey(0)
    kx, kw1, kb1, kw2, kb2 = jax.random.split(key, 5)
    x = jax.random.normal(kx, (N, Cin, H, W), dtype=jnp.float32)
    w1 = jax.random.normal(kw1, (Cmid, Cin, K, K), dtype=jnp.float32) * 0.1
    b1 = jax.random.normal(kb1, (Cmid,), dtype=jnp.float32) * 0.1
    w2 = jax.random.normal(kw2, (Cout, Cmid, K, K), dtype=jnp.float32) * 0.1
    b2 = jax.random.normal(kb2, (Cout,), dtype=jnp.float32) * 0.1

    params = prepare_weights(w1, b1, w2, b2, W=W)          # built once, not per call
    out = jax.block_until_ready(residual_block(x, params))

    ref = jax.block_until_ready(_reference(x, w1, b1, w2, b2))
    assert out.shape == (N, Cout, H, W)
    # bf16 MXU operands with f32 accumulation -> loosened tolerance vs the f32 kernel.
    err = float(jnp.max(jnp.abs(out - ref)))
    assert err < 1e-1, f"mismatch vs reference conv: max abs err {err}"

    print("KERNEL_OK")
</pallas_src>

<mosaic_0001>
module attributes {stable_mosaic.version = 11 : i64} {
  func.func @_resblock_kernel(%arg0: i32, %arg1: memref<1x32x128xbf16, #tpu.memory_space<vmem>>, %arg2: memref<384x128xbf16, #tpu.memory_space<vmem>>, %arg3: memref<1x128xf32, #tpu.memory_space<vmem>>, %arg4: memref<384x128xbf16, #tpu.memory_space<vmem>>, %arg5: memref<1x128xf32, #tpu.memory_space<vmem>>, %arg6: memref<1x32x128xf32, #tpu.memory_space<vmem>>) attributes {dimension_semantics = [#tpu.dimension_semantics<parallel>], iteration_bounds = array<i64: 1>, scalar_prefetch = 0 : i64, scratch_operands = 0 : i64, tpu.core_type = #tpu.core_type<tc>, window_params = [{transform_indices = @transform_0, window_bounds = array<i64: 1, 32, 128>}, {pipeline_mode = #tpu.pipeline_mode<synchronous>, transform_indices = @transform_1, window_bounds = array<i64: 384, 128>}, {pipeline_mode = #tpu.pipeline_mode<synchronous>, transform_indices = @transform_2, window_bounds = array<i64: 1, 128>}, {pipeline_mode = #tpu.pipeline_mode<synchronous>, transform_indices = @transform_3, window_bounds = array<i64: 384, 128>}, {pipeline_mode = #tpu.pipeline_mode<synchronous>, transform_indices = @transform_4, window_bounds = array<i64: 1, 128>}, {transform_indices = @transform_5, window_bounds = array<i64: 1, 32, 128>}]} {
    %0 = tpu.iota {dimensions = array<i32: 0>} : vector<32x1xi32>
    %c16_i32 = arith.constant 16 : i32
    %c0_i32 = arith.constant 0 : i32
    %1 = arith.cmpi eq, %c16_i32, %c0_i32 : i32
    %c1_i32 = arith.constant 1 : i32
    %2 = arith.select %1, %c1_i32, %c16_i32 : i32
    %3 = vector.broadcast %2 : i32 to vector<32x1xi32>
    %4 = arith.remsi %0, %3 : vector<32x1xi32>
    %c0_i32_0 = arith.constant 0 : i32
    %5 = vector.broadcast %c0_i32_0 : i32 to vector<32x1xi32>
    %6 = arith.cmpi ne, %4, %5 : vector<32x1xi32>
    %c0_i32_1 = arith.constant 0 : i32
    %7 = vector.broadcast %c0_i32_1 : i32 to vector<32x1xi32>
    %8 = arith.cmpi slt, %4, %7 : vector<32x1xi32>
    %c0_i32_2 = arith.constant 0 : i32
    %9 = arith.cmpi slt, %2, %c0_i32_2 : i32
    %10 = vector.broadcast %9 : i1 to vector<32x1xi1>
    %11 = vector.broadcast %10 : vector<32x1xi1> to vector<32x1xi1>
    %12 = arith.xori %8, %11 : vector<32x1xi1>
    %13 = arith.andi %12, %6 : vector<32x1xi1>
    %14 = vector.broadcast %2 : i32 to vector<32x1xi32>
    %15 = arith.addi %4, %14 : vector<32x1xi32>
    %16 = arith.select %13, %15, %4 : vector<32x1xi1>, vector<32x1xi32>
    %c0 = arith.constant 0 : index
    %c0_3 = arith.constant 0 : index
    %c0_4 = arith.constant 0 : index
    %17 = vector.load %arg1[%c0, %c0_3, %c0_4] : memref<1x32x128xbf16, #tpu.memory_space<vmem>>, vector<1x32x128xbf16>
    %18 = vector.shape_cast %17 : vector<1x32x128xbf16> to vector<32x128xbf16>
    %19 = arith.extf %18 : vector<32x128xbf16> to vector<32x128xf32>
    %c1_i32_5 = arith.constant 1 : i32
    %20 = tpu.dynamic_rotate %19 by %c1_i32_5 dim 0 : vector<32x128xf32>, i32 -> vector<32x128xf32>
    %c1_i32_6 = arith.constant 1 : i32
    %21 = vector.broadcast %c1_i32_6 : i32 to vector<32x1xi32>
    %22 = arith.cmpi slt, %16, %21 : vector<32x1xi32>
    %cst = arith.constant 0.000000e+00 : f32
    %23 = vector.broadcast %cst : f32 to vector<32x128xf32>
    %24 = vector.shape_cast %22 : vector<32x1xi1> to vector<32x1xi1>
    %25 = vector.broadcast %24 : vector<32x1xi1> to vector<32x128xi1>
    %26 = arith.select %25, %23, %20 : vector<32x128xi1>, vector<32x128xf32>
    %c31_i32 = arith.constant 31 : i32
    %27 = tpu.dynamic_rotate %19 by %c31_i32 dim 0 : vector<32x128xf32>, i32 -> vector<32x128xf32>
    %c15_i32 = arith.constant 15 : i32
    %28 = vector.broadcast %c15_i32 : i32 to vector<32x1xi32>
    %29 = arith.cmpi sge, %16, %28 : vector<32x1xi32>
    %cst_7 = arith.constant 0.000000e+00 : f32
    %30 = vector.broadcast %cst_7 : f32 to vector<32x128xf32>
    %31 = vector.shape_cast %29 : vector<32x1xi1> to vector<32x1xi1>
    %32 = vector.broadcast %31 : vector<32x1xi1> to vector<32x128xi1>
    %33 = arith.select %32, %30, %27 : vector<32x128xi1>, vector<32x128xf32>
    %34 = tpu.concatenate %26, %19, %33 in 1 : vector<32x128xf32>, vector<32x128xf32>, vector<32x128xf32> -> vector<32x384xf32>
    %35 = arith.truncf %34 : vector<32x384xf32> to vector<32x384xbf16>
    %c0_8 = arith.constant 0 : index
    %c0_9 = arith.constant 0 : index
    %36 = vector.load %arg2[%c0_8, %c0_9] : memref<384x128xbf16, #tpu.memory_space<vmem>>, vector<384x128xbf16>
    %cst_10 = arith.constant dense<0.000000e+00> : vector<32x128xf32>
    %37 = tpu.matmul %35, %36, %cst_10 {dimension_numbers = #tpu.dot_dimension_numbers<[1], [0], [0], [1], [0, 0, 1, 1], [], []>} : vector<32x384xbf16>, vector<384x128xbf16>, vector<32x128xf32> -> vector<32x128xf32>
    %c0_11 = arith.constant 0 : index
    %c0_12 = arith.constant 0 : index
    %38 = vector.load %arg3[%c0_11, %c0_12] : memref<1x128xf32, #tpu.memory_space<vmem>>, vector<1x128xf32>
    %39 = vector.broadcast %38 : vector<1x128xf32> to vector<32x128xf32>
    %40 = arith.addf %37, %39 : vector<32x128xf32>
    %cst_13 = arith.constant 0.000000e+00 : f32
    %41 = vector.broadcast %cst_13 : f32 to vector<32x128xf32>
    %42 = arith.maximumf %40, %41 : vector<32x128xf32>
    %c1_i32_14 = arith.constant 1 : i32
    %43 = tpu.dynamic_rotate %42 by %c1_i32_14 dim 0 : vector<32x128xf32>, i32 -> vector<32x128xf32>
    %c1_i32_15 = arith.constant 1 : i32
    %44 = vector.broadcast %c1_i32_15 : i32 to vector<32x1xi32>
    %45 = arith.cmpi slt, %16, %44 : vector<32x1xi32>
    %cst_16 = arith.constant 0.000000e+00 : f32
    %46 = vector.broadcast %cst_16 : f32 to vector<32x128xf32>
    %47 = vector.shape_cast %45 : vector<32x1xi1> to vector<32x1xi1>
    %48 = vector.broadcast %47 : vector<32x1xi1> to vector<32x128xi1>
    %49 = arith.select %48, %46, %43 : vector<32x128xi1>, vector<32x128xf32>
    %c31_i32_17 = arith.constant 31 : i32
    %50 = tpu.dynamic_rotate %42 by %c31_i32_17 dim 0 : vector<32x128xf32>, i32 -> vector<32x128xf32>
    %c15_i32_18 = arith.constant 15 : i32
    %51 = vector.broadcast %c15_i32_18 : i32 to vector<32x1xi32>
    %52 = arith.cmpi sge, %16, %51 : vector<32x1xi32>
    %cst_19 = arith.constant 0.000000e+00 : f32
    %53 = vector.broadcast %cst_19 : f32 to vector<32x128xf32>
    %54 = vector.shape_cast %52 : vector<32x1xi1> to vector<32x1xi1>
    %55 = vector.broadcast %54 : vector<32x1xi1> to vector<32x128xi1>
    %56 = arith.select %55, %53, %50 : vector<32x128xi1>, vector<32x128xf32>
    %57 = tpu.concatenate %49, %42, %56 in 1 : vector<32x128xf32>, vector<32x128xf32>, vector<32x128xf32> -> vector<32x384xf32>
    %58 = arith.truncf %57 : vector<32x384xf32> to vector<32x384xbf16>
    %c0_20 = arith.constant 0 : index
    %c0_21 = arith.constant 0 : index
    %59 = vector.load %arg4[%c0_20, %c0_21] : memref<384x128xbf16, #tpu.memory_space<vmem>>, vector<384x128xbf16>
    %cst_22 = arith.constant dense<0.000000e+00> : vector<32x128xf32>
    %60 = tpu.matmul %58, %59, %cst_22 {dimension_numbers = #tpu.dot_dimension_numbers<[1], [0], [0], [1], [0, 0, 1, 1], [], []>} : vector<32x384xbf16>, vector<384x128xbf16>, vector<32x128xf32> -> vector<32x128xf32>
    %c0_23 = arith.constant 0 : index
    %c0_24 = arith.constant 0 : index
    %61 = vector.load %arg5[%c0_23, %c0_24] : memref<1x128xf32, #tpu.memory_space<vmem>>, vector<1x128xf32>
    %62 = vector.broadcast %61 : vector<1x128xf32> to vector<32x128xf32>
    %63 = arith.addf %60, %62 : vector<32x128xf32>
    %c0_25 = arith.constant 0 : index
    %c0_26 = arith.constant 0 : index
    %c0_27 = arith.constant 0 : index
    %64 = vector.load %arg6[%c0_25, %c0_26, %c0_27] : memref<1x32x128xf32, #tpu.memory_space<vmem>>, vector<1x32x128xf32>
    %65 = vector.shape_cast %64 : vector<1x32x128xf32> to vector<32x128xf32>
    %66 = vector.shape_cast %63 : vector<32x128xf32> to vector<1x32x128xf32>
    tpu.vector_store %arg6[%c0_25, %c0_26, %c0_27], %66 {strides = array<i32>} : memref<1x32x128xf32, #tpu.memory_space<vmem>>, vector<1x32x128xf32>,
    return
  }
  func.func @transform_0(%arg0: i32) -> (i32, i32, i32) {
    %c0_i32 = arith.constant 0 : i32
    %c0_i32_0 = arith.constant 0 : i32
    %c0_i32_1 = arith.constant 0 : i32
    return %arg0, %c0_i32, %c0_i32_0 : i32, i32, i32
  }
  func.func @transform_1(%arg0: i32) -> (i32, i32) {
    %c0_i32 = arith.constant 0 : i32
    %c0_i32_0 = arith.constant 0 : i32
    %c0_i32_1 = arith.constant 0 : i32
    return %c0_i32, %c0_i32_0 : i32, i32
  }
  func.func @transform_2(%arg0: i32) -> (i32, i32) {
    %c0_i32 = arith.constant 0 : i32
    %c0_i32_0 = arith.constant 0 : i32
    %c0_i32_1 = arith.constant 0 : i32
    return %c0_i32, %c0_i32_0 : i32, i32
  }
  func.func @transform_3(%arg0: i32) -> (i32, i32) {
    %c0_i32 = arith.constant 0 : i32
    %c0_i32_0 = arith.constant 0 : i32
    %c0_i32_1 = arith.constant 0 : i32
    return %c0_i32, %c0_i32_0 : i32, i32
  }
  func.func @transform_4(%arg0: i32) -> (i32, i32) {
    %c0_i32 = arith.constant 0 : i32
    %c0_i32_0 = arith.constant 0 : i32
    %c0_i32_1 = arith.constant 0 : i32
    return %c0_i32, %c0_i32_0 : i32, i32
  }
  func.func @transform_5(%arg0: i32) -> (i32, i32, i32) {
    %c0_i32 = arith.constant 0 : i32
    %c0_i32_0 = arith.constant 0 : i32
    %c0_i32_1 = arith.constant 0 : i32
    return %arg0, %c0_i32, %c0_i32_0 : i32, i32, i32
  }
}

</mosaic_0001>

<bundles_post_ra>
// kernel: _forward.1
= control target key start
LH: loop header
LB: loop body
LE: loop exit
PB: predicated region body
PF: predicated region fallthrough
CT: control target
= control target key end

     0   :  { %v20_v12 = vlaneseq  ;;  %vm989_vm4 = vmmov 1   ;;  %s1269_s1 = inlined_call_operand.vmem [shape: bf16[384,128], index: 1, kind: input, shape index: {}]   ;;  %s1270_s2 = inlined_call_operand.vmem [shape: f32[1,128], index: 2, kind: input, shape index: {}]   ;;  %s1271_s0 = inlined_call_operand.vmem [shape: bf16[1,32,128], index: 0, kind: input, shape index: {}]   ;;  %s1272_s3 = inlined_call_operand.vmem [shape: bf16[384,128], index: 3, kind: input, shape index: {}]   ;;  %s1273_s4 = inlined_call_operand.vmem [shape: f32[1,128], index: 4, kind: input, shape index: {}]   ;;  %s1274_s5 = inlined_call_operand.vmem [shape: f32[1,32,128], index: 5, kind: output, shape index: {}]  }
   0x1   :  { %v916_v0 = vld [vmem:[%s1269_s1 + $0x38] sm:$0xff]  ;;  %v915_v3 = vld [vmem:[%s1269_s1 + $0x30] sm:$0xff]  ;;  %v914_v6 = vld [vmem:[%s1269_s1 + $0x28] sm:$0xff] }
   0x2   :  { %v924_v1 = vld [vmem:[%s1269_s1 + $0x78] sm:$0xff]  ;;  %333 = vmatpush.bf16.msra.mxu0 %v916_v0  ;;  %v923_v4 = vld [vmem:[%s1269_s1 + $0x70] sm:$0xff]  ;;  %v922_v7 = vld [vmem:[%s1269_s1 + $0x68] sm:$0xff]  ;;  %v1073_v18 = vshrl.u32 %v20_v12, 7 }
   0x3   :  { %v932_v2 = vld [vmem:[%s1269_s1 + $0xb8] sm:$0xff]  ;;  %352 = vmatpush.bf16.msra.mxu1 %v924_v1  ;;  %v931_v5 = vld [vmem:[%s1269_s1 + $0xb0] sm:$0xff]  ;;  %v930_v8 = vld [vmem:[%s1269_s1 + $0xa8] sm:$0xff] }
   0x4   :  { %371 = vmatpush.bf16.msra.mxu2 %v932_v2  ;;  %v913_v9 = vld [vmem:[%s1269_s1 + $0x20] sm:$0xff]  ;;  %v912_v13 = vld [vmem:[%s1269_s1 + $0x18] sm:$0xff]  ;;  %v1071_v17 = vld [vmem:[%s1271_s0 + $0x8] sm:$0xff]   ;;  %v22_v26 = vadd.s32 8, %v1073_v18  ;;  %v29_v29 = vand.u32 15, %v1073_v18  ;;  %vm85_vm0 = vcmp.lt.s32.totalorder %v1073_v18, 1 }
   0x5   :  { %v921_v10 = vld [vmem:[%s1269_s1 + $0x60] sm:$0xff]  ;;  %v920_v14 = vld [vmem:[%s1269_s1 + $0x58] sm:$0xff]  ;;  %v911_v19 = vld [vmem:[%s1269_s1 + $0x10] sm:$0xff]  ;;  %v964_v23 = vunpack.c.h.bf16 %v1071_v17  ;;  %v963_v25 = vunpack.c.l.bf16 %v1071_v17  ;;  %vm110_vm1 = vcmp.lt.s32.totalorder %v1073_v18, 7  ;;  %v23_v51 = vadd.s32 16, %v1073_v18 }
   0x6   :  { %334 = vmatpush.bf16.msra.mxu0 %v915_v3  ;;  %v929_v11 = vld [vmem:[%s1269_s1 + $0xa0] sm:$0xff]  ;;  %v928_v15 = vld [vmem:[%s1269_s1 + $0x98] sm:$0xff]  ;;  %v919_v20 = vld [vmem:[%s1269_s1 + $0x50] sm:$0xff]  ;;  %v36_v37 = vand.u32 15, %v22_v26  ;;  %vm966_vm2 = vcmp.ge.s32.totalorder %v29_v29, 1  ;;  %v24_v53 = vadd.s32 24, %v1073_v18 }
   0x7   :  { %353 = vmatpush.bf16.msra.mxu1 %v923_v4  ;;  %v958_v16 = vld [vmem:[%s1271_s0] sm:$0xff]   ;;  %v927_v24 = vld [vmem:[%s1269_s1 + $0x90] sm:$0xff]  ;;  %v910_v27 = vld [vmem:[%s1269_s1 + $0x8] sm:$0xff]  ;;  %v84_v32 = vrot.slane %v964_v23, 7  ;;  %v108_v36 = vrot.slane %v963_v25, 1  ;;  %v83_v54 = vrot.slane %v963_v25, 7 }
   0x8   :  { %372 = vmatpush.bf16.msra.mxu2 %v931_v5  ;;  %v959_v21 = vunpack.c.l.bf16 %v958_v16  ;;  %v960_v22 = vunpack.c.h.bf16 %v958_v16  ;;  %v918_v28 = vld [vmem:[%s1269_s1 + $0x48] sm:$0xff]  ;;  %v909_v38 = vld [vmem:[%s1269_s1] sm:$0xff]  ;;  %v948_v45 = vld [vmem:[%s1272_s3 + $0x78] sm:$0xff]  ;;  %vm968_vm3 = vcmp.lt.s32.totalorder %v36_v37, 15  ;;  %v43_v55 = vand.u32 15, %v23_v51 }
   0x9   :  { %v926_v33 = vld [vmem:[%s1269_s1 + $0x88] sm:$0xff]  ;;  %v917_v39 = vld [vmem:[%s1269_s1 + $0x40] sm:$0xff]  ;;  %vm1120_vm5 = vmpackc.low %vm989_vm4, %vm966_vm2  ;;  %v109_v56 = vrot.slane %v964_v23, 1  ;;  %v50_v57 = vand.u32 15, %v24_v53  ;;  %v86_v58 = vsel %vm85_vm0, %v83_v54, %v84_v32 }
   0xa   :  { %335 = vmatpush.bf16.msra.mxu0 %v914_v6  ;;  %v81_v30 = vrot.slane %v959_v21, 7  ;;  %v82_v31 = vrot.slane %v960_v22, 7  ;;  %v106_v34 = vrot.slane %v959_v21, 1  ;;  %v107_v35 = vrot.slane %v960_v22, 1  ;;  %v925_v42 = vld [vmem:[%s1269_s1 + $0x80] sm:$0xff]  ;;  %vm1125_vm6 = vmpackc.low %vm968_vm3, %vm989_vm4  ;;  %v947_v50 = vld [vmem:[%s1272_s3 + $0x70] sm:$0xff] }
   0xb   :  { %354 = vmatpush.bf16.msra.mxu1 %v922_v7  ;;  %v946_v52 = vld [vmem:[%s1272_s3 + $0x68] sm:$0xff]  ;;  %vm967_vm7 = vcmp.ge.s32.totalorder %v43_v55, 1  ;;  %v111_v60 = vsel %vm110_vm1, %v108_v36, %v109_v56  ;;  %vm969_vm8 = vcmp.lt.s32.totalorder %v50_v57, 15  ;;  %v956_v2 = vld [vmem:[%s1272_s3 + $0xb8] sm:$0xff]  ;;  %v945_v3 = vld [vmem:[%s1272_s3 + $0x60] sm:$0xff] }
   0xc   :  { %373 = vmatpush.bf16.msra.mxu2 %v930_v8  ;;  %v88_v40 = vsel %vm85_vm0, %v81_v30, %v82_v31  ;;  %v89_v41 = vsel %vm85_vm0, %v84_v32, %v81_v30  ;;  %v112_v43 = vsel %vm110_vm1, %v107_v35, %v108_v36  ;;  %v113_v44 = vsel %vm110_vm1, %v106_v34, %v107_v35  ;;  %vm1150_vm9 = vmpackc.low %vm989_vm4, %vm967_vm7  ;;  %v955_v4 = vld [vmem:[%s1272_s3 + $0xb0] sm:$0xff]  ;;  %v944_v5 = vld [vmem:[%s1272_s3 + $0x58] sm:$0xff] }
   0xd   :  { %v783_v46 = vpack.c.bf16 %v88_v40, %v89_v41  ;;  %v791_v48 = vpack.c.bf16 %v112_v43, %v113_v44  ;;  %v87_v59 = vsel %vm85_vm0, %v82_v31, %v83_v54  ;;  %v114_v61 = vsel %vm110_vm1, %v109_v56, %v106_v34  ;;  %vm1155_vm10 = vmpackc.low %vm969_vm8, %vm989_vm4  ;;  %v940_v6 = vld [vmem:[%s1272_s3 + $0x38] sm:$0xff]  ;;  %v954_v7 = vld [vmem:[%s1272_s3 + $0xa8] sm:$0xff] }
   0xe   :  { %336 = vmatpush.bf16.msra.mxu0 %v913_v9  ;;  %v787_v62 = vpack.c.bf16 %v86_v58, %v87_v59  ;;  %v795_v0 = vpack.c.bf16 %v114_v61, %v111_v60  ;;  %v943_v8 = vld [vmem:[%s1272_s3 + $0x50] sm:$0xff]  ;;  %620 = vmatpush.bf16.msra.mxu3 %v940_v6  ;;  %v938_v12 = vld [vmem:[%s1272_s3 + $0x28] sm:$0xff]  ;;  %v949_v21 = vld [vmem:[%s1272_s3 + $0x80] sm:$0xff] }
   0xf   :  { %355 = vmatpush.bf16.msra.mxu1 %v921_v10  ;;  %v939_v9 = vld [vmem:[%s1272_s3 + $0x30] sm:$0xff]  ;;  %v953_v10 = vld [vmem:[%s1272_s3 + $0xa0] sm:$0xff] }
  0x10   :  { %374 = vmatpush.bf16.msra.mxu2 %v929_v11  ;;  %v942_v11 = vld [vmem:[%s1272_s3 + $0x48] sm:$0xff]  ;;  %v987_v25 = vld [vmem:[%s1270_s2] ss:$0 sm:$0xff] }
  0x11   :  { %v933_v26 = vld [vmem:[%s1272_s3] sm:$0xff] }
  0x12   :  { %337 = vmatpush.bf16.msra.mxu0 %v912_v13  ;;  %621 = vmatpush.bf16.msra.mxu3 %v939_v9  ;;  %v952_v13 = vld [vmem:[%s1272_s3 + $0x98] sm:$0xff] }
  0x13   :  { %356 = vmatpush.bf16.msra.mxu1 %v920_v14  ;;  %v941_v14 = vld [vmem:[%s1272_s3 + $0x40] sm:$0xff] }
  0x14   :  { %375 = vmatpush.bf16.msra.mxu2 %v928_v15  ;;  %v937_v15 = vld [vmem:[%s1272_s3 + $0x20] sm:$0xff] }
  0x16   :  { %338 = vmatpush.bf16.msra.mxu0 %v911_v19  ;;  %622 = vmatpush.bf16.msra.mxu3 %v938_v12  ;;  %v950_v19 = vld [vmem:[%s1272_s3 + $0x88] sm:$0xff] }
  0x17   :  { %357 = vmatpush.bf16.msra.mxu1 %v919_v20  ;;  %v935_v20 = vld [vmem:[%s1272_s3 + $0x10] sm:$0xff] }
  0x18   :  { %376 = vmatpush.bf16.msra.mxu2 %v927_v24  ;;  %v934_v24 = vld [vmem:[%s1272_s3 + $0x8] sm:$0xff] }
  0x1a   :  { %339 = vmatpush.bf16.msra.mxu0 %v910_v27  ;;  %623 = vmatpush.bf16.msra.mxu3 %v937_v15 }
  0x1b   :  { %358 = vmatpush.bf16.msra.mxu1 %v918_v28 }
  0x1c   :  { %377 = vmatpush.bf16.msra.mxu2 %v926_v33 }
  0x1e   :  { %340 = vmatpush.bf16.msra.mxu0 %v909_v38 }
  0x1f   :  { %359 = vmatpush.bf16.msra.mxu1 %v917_v39 }
  0x20   :  { %378 = vmatpush.bf16.msra.mxu2 %v925_v42 }
  0x21   :  { %784 = vmatmul.msk.bf16.vlgmr.msra.gmra.mxu0 %vm1120_vm5, %v783_v46 }
  0x22   :  { %639 = vmatpush.bf16.msrb.mxu0 %v948_v45  ;;  %360 = vmatmul.bf16.vlgmr.msra.gmra.mxu1 %v958_v16  ;;  %v951_v16 = vld [vmem:[%s1272_s3 + $0x90] sm:$0xff] }
  0x23   :  { %792 = vmatmul.msk.bf16.vlgmr.msra.gmra.mxu2 %vm1125_vm6, %v791_v48  ;;  %658 = vmatpush.bf16.msrb.mxu1 %v956_v2 }
  0x24   :  { %970 = vmatpush.bf16.msrb.mxu2 %v948_v45 }
  0x26   :  { %640 = vmatpush.bf16.msrb.mxu0 %v947_v50 }
  0x27   :  { %659 = vmatpush.bf16.msrb.mxu1 %v955_v4 }
  0x28   :  { %971 = vmatpush.bf16.msrb.mxu2 %v947_v50 }
  0x2a   :  { %641 = vmatpush.bf16.msrb.mxu0 %v946_v52 }
  0x2b   :  { %660 = vmatpush.bf16.msrb.mxu1 %v954_v7 }
  0x2c   :  { %972 = vmatpush.bf16.msrb.mxu2 %v946_v52 }
  0x2e   :  { %642 = vmatpush.bf16.msrb.mxu0 %v945_v3 }
  0x2f   :  { %661 = vmatpush.bf16.msrb.mxu1 %v953_v10 }
  0x30   :  { %973 = vmatpush.bf16.msrb.mxu2 %v945_v3 }
  0x31   :  { %788 = vmatmul.msk.bf16.gmra.mxu0 %vm1150_vm9, %v787_v62 }
  0x32   :  { %365 = vmatmul.bf16.gmra.mxu1 %v1071_v17  ;;  %643 = vmatpush.bf16.msrb.mxu0 %v944_v5  ;;  %v936_v17 = vld [vmem:[%s1272_s3 + $0x18] sm:$0xff] }
  0x33   :  { %796 = vmatmul.msk.bf16.gmra.mxu2 %vm1155_vm10, %v795_v0  ;;  %662 = vmatpush.bf16.msrb.mxu1 %v952_v13 }
  0x34   :  { %974 = vmatpush.bf16.msrb.mxu2 %v944_v5  ;;  %624 = vmatpush.bf16.msra.mxu3 %v936_v17 }
  0x36   :  { %644 = vmatpush.bf16.msrb.mxu0 %v943_v8 }
  0x37   :  { %663 = vmatpush.bf16.msrb.mxu1 %v951_v16 }
  0x38   :  { %975 = vmatpush.bf16.msrb.mxu2 %v943_v8  ;;  %625 = vmatpush.bf16.msra.mxu3 %v935_v20 }
  0x3a   :  { %645 = vmatpush.bf16.msrb.mxu0 %v942_v11 }
  0x3b   :  { %664 = vmatpush.bf16.msrb.mxu1 %v950_v19 }
  0x3c   :  { %976 = vmatpush.bf16.msrb.mxu2 %v942_v11  ;;  %626 = vmatpush.bf16.msra.mxu3 %v934_v24 }
  0x3e   :  { %646 = vmatpush.bf16.msrb.mxu0 %v941_v14 }
  0x3f   :  { %665 = vmatpush.bf16.msrb.mxu1 %v949_v21 }
  0x40   :  { %977 = vmatpush.bf16.msrb.mxu2 %v941_v14  ;;  %627 = vmatpush.bf16.msra.mxu3 %v933_v26 }
  0x44   :  { %978 = vmatpush.bf16.msrb.mxu3 %v956_v2 }
  0x48   :  { %979 = vmatpush.bf16.msrb.mxu3 %v955_v4 }
  0x4c   :  { %980 = vmatpush.bf16.msrb.mxu3 %v954_v7 }
  0x50   :  { %981 = vmatpush.bf16.msrb.mxu3 %v953_v10 }
  0x54   :  { %982 = vmatpush.bf16.msrb.mxu3 %v952_v13  ;;  %v988_v13 = vld [vmem:[%s1273_s4] ss:$0 sm:$0xff] }
  0x58   :  { %983 = vmatpush.bf16.msrb.mxu3 %v951_v16 }
  0x5c   :  { %984 = vmatpush.bf16.msrb.mxu3 %v950_v19 }
  0x60   :  { %985 = vmatpush.bf16.msrb.mxu3 %v949_v21 }
  0x9e   :  { %v342_v22 = vpop.f32.mrf.mxu0 }
  0x9f   :  { %v361_v23 = vpop.f32.mrf.mxu1  ;;  %v343_v27 = vadd.f32 %v987_v25, %v342_v22 }
  0xa1   :  { %v362_v31 = vadd.f32 %v361_v23, %v343_v27 }
  0xa6   :  { %v380_v28 = vpop.f32.mrf.mxu2  ;;  %v344_v29 = vpop.f32.mrf.mxu0 }
  0xa7   :  { %v363_v30 = vpop.f32.mrf.mxu1  ;;  %v345_v32 = vadd.f32 %v987_v25, %v344_v29  ;;  %v381_v33 = vadd.f32 %v380_v28, %v362_v31 }
  0xa9   :  { %v364_v34 = vadd.f32 %v363_v30, %v345_v32  ;;  %v390_v39 = vmax.f32 %v381_v33, 0.0 }
  0xab   :  { %v406_v52 = vrot.slane %v390_v39, 1  ;;  %v394_v0 = vrot.slane %v390_v39, 7 }
  0xae   :  { %v382_v35 = vpop.f32.mrf.mxu2  ;;  %v347_v37 = vpop.f32.mrf.mxu0 }
  0xaf   :  { %v383_v36 = vadd.f32 %v382_v35, %v364_v34  ;;  %v348_v38 = vadd.f32 %v987_v25, %v347_v37  ;;  %v366_v41 = vpop.f32.mrf.mxu1 }
  0xb1   :  { %v391_v40 = vmax.f32 %v383_v36, 0.0  ;;  %v367_v42 = vadd.f32 %v366_v41, %v348_v38 }
  0xb3   :  { %v419_v43 = vpack.c.bf16 %v391_v40, %v390_v39  ;;  %v407_v48 = vrot.slane %v391_v40, 1  ;;  %v395_v61 = vrot.slane %v391_v40, 7 }
  0xb5   :  { %647 = vmatmul.bf16.vlgmr.msrb.gmra.mxu0 %v419_v43  ;;  %v412_v57 = vsel %vm110_vm1, %v406_v52, %v407_v48  ;;  %v400_v4 = vsel %vm85_vm0, %v394_v0, %v395_v61 }
  0xb6   :  { %v385_v44 = vpop.f32.mrf.mxu2  ;;  %v349_v46 = vpop.f32.mrf.mxu0 }
  0xb7   :  { %v386_v45 = vadd.f32 %v385_v44, %v367_v42  ;;  %v350_v51 = vadd.f32 %v987_v25, %v349_v46  ;;  %v368_v54 = vpop.f32.mrf.mxu1 }
  0xb9   :  { %v392_v50 = vmax.f32 %v386_v45, 0.0  ;;  %v369_v55 = vadd.f32 %v368_v54, %v350_v51 }
  0xbb   :  { %v408_v53 = vrot.slane %v392_v50, 1  ;;  %v396_v7 = vrot.slane %v392_v50, 7 }
  0xbd   :  { %v411_v56 = vsel %vm110_vm1, %v407_v48, %v408_v53  ;;  %v399_v8 = vsel %vm85_vm0, %v395_v61, %v396_v7 }
  0xbe   :  { %v387_v58 = vpop.f32.mrf.mxu2  ;;  %v903_v59 = vpack.c.bf16 %v411_v56, %v412_v57 }
  0xbf   :  { %v388_v60 = vadd.f32 %v387_v58, %v369_v55 }
  0xc0   :  { %904 = vmatmul.msk.bf16.vlgmr.msrb.gmra.mxu1 %vm1125_vm6, %v903_v59 }
  0xc1   :  { %v393_v62 = vmax.f32 %v388_v60, 0.0 }
  0xc3   :  { %v397_v2 = vrot.slane %v393_v62, 7  ;;  %v422_v3 = vpack.c.bf16 %v393_v62, %v392_v50  ;;  %v409_v10 = vrot.slane %v393_v62, 1 }
  0xc5   :  { %652 = vmatmul.bf16.vlgmr.msrb.gmra.mxu2 %v422_v3  ;;  %v401_v5 = vsel %vm85_vm0, %v397_v2, %v394_v0  ;;  %v398_v49 = vsel %vm85_vm0, %v396_v7, %v397_v2  ;;  %v410_v11 = vsel %vm110_vm1, %v408_v53, %v409_v10  ;;  %v413_v12 = vsel %vm110_vm1, %v409_v10, %v406_v52 }
  0xc6   :  { %v895_v6 = vpack.c.bf16 %v400_v4, %v401_v5  ;;  %v899_v9 = vpack.c.bf16 %v398_v49, %v399_v8  ;;  %v907_v47 = vpack.c.bf16 %v413_v12, %v410_v11 }
  0xc8   :  { %896 = vmatmul.msk.bf16.vlgmr.msra.gmra.mxu3 %vm1120_vm5, %v895_v6 }
  0xd8   :  { %900 = vmatmul.msk.bf16.gmra.mxu3 %vm1150_vm9, %v899_v9 }
  0xe8   :  { %908 = vmatmul.msk.bf16.vlgmr.msrb.gmra.mxu3 %vm1155_vm10, %v907_v47 }
 0x132   :  { %v648_v14 = vpop.f32.mrf.mxu0 }
 0x13a   :  { %v650_v21 = vpop.f32.mrf.mxu0 }
 0x13d   :  { %v667_v63 = vpop.f32.mrf.mxu1 }
 0x145   :  { %v669_v1 = vpop.f32.mrf.mxu1 }
 0x148   :  { %v653_v27 = vpop.f32.mrf.mxu2 }
 0x14b   :  { %v629_v15 = vpop.f32.mrf.mxu3 }
 0x14c   :  { %v630_v16 = vadd.f32 %v988_v13, %v629_v15 }
 0x14e   :  { %v649_v17 = vadd.f32 %v648_v14, %v630_v16 }
 0x150   :  { %v668_v19 = vadd.f32 %v667_v63, %v649_v17  ;;  %v655_v32 = vpop.f32.mrf.mxu2 }
 0x152   :  { %677 = vst [vmem:[%s1274_s5] sm:$0xff] %v668_v19 }
 0x153   :  { %v631_v18 = vpop.f32.mrf.mxu3 }
 0x154   :  { %v632_v20 = vadd.f32 %v988_v13, %v631_v18 }
 0x156   :  { %v651_v22 = vadd.f32 %v650_v21, %v632_v20 }
 0x158   :  { %v670_v23 = vadd.f32 %v669_v1, %v651_v22 }
 0x15a   :  { %678 = vst [vmem:[%s1274_s5 + $0x8] sm:$0xff] %v670_v23 }
 0x15b   :  { %v634_v24 = vpop.f32.mrf.mxu3 }
 0x15c   :  { %v635_v26 = vadd.f32 %v988_v13, %v634_v24 }
 0x15e   :  { %v654_v28 = vadd.f32 %v653_v27, %v635_v26 }
 0x163   :  { %v636_v25 = vpop.f32.mrf.mxu3 }
 0x164   :  { %v637_v31 = vadd.f32 %v988_v13, %v636_v25 }
 0x166   :  { %v656_v33 = vadd.f32 %v655_v32, %v637_v31 }
 0x16b   :  { %v672_v29 = vpop.f32.mrf.mxu3 }
 0x16c   :  { %v673_v30 = vadd.f32 %v672_v29, %v654_v28 }
 0x16e   :  { %679 = vst [vmem:[%s1274_s5 + $0x10] sm:$0xff] %v673_v30 }
 0x173   :  { %v674_v34 = vpop.f32.mrf.mxu3 }
 0x174   :  { %v675_v35 = vadd.f32 %v674_v34, %v656_v33 }
 0x176   :  { %680 = vst [vmem:[%s1274_s5 + $0x18] sm:$0xff] %v675_v35 }

</bundles_post_ra>
